<compile_context>
chip_gen: v7x
topology: tpu7x:2x2x1
jax: 0.10.0
libtpu: 0.0.40
codegen_flags: <defaults>
</compile_context>

<pallas_src>
import functools

import jax
import jax.numpy as jnp
import numpy as np
from jax.experimental import pallas as pl
from jax.experimental.pallas import tpu as pltpu


def _round_up(v, m):
    return (v + m - 1) // m * m


def convup_kernel(x_ref, y_ref, bias1_ref, mask_ref,
                  bn0_s_ref, bn0_b_ref, w0_ref,
                  bn1_s_ref, w1_ref, b1_ref,
                  out_ref, *, W, HWp, sz, B, mm_dtype):
    # x_ref:    (B, Cin_p, HWp) bf16     y_ref:   (B, Cout, HWp) bf16
    # bias1_ref:(B, Cout, 1)  f32        out_ref: (B, Cout, HWp) f32
    # mask_ref: (sz*sz, HWp)  f32 {0,1}  per-tap SAME-padding validity masks
    # w0_ref:   (Cout, sz*sz*Cin_p) mm_dtype  (bn1_s already folded in)
    # w1_ref:   (Cout, sz*sz*Cout)  mm_dtype
    # bn*/b1:   per-channel (C, 1) f32 columns
    p = sz // 2

    # Grid-step-invariant operands: load once, reuse for all B images.
    masks = mask_ref[...]
    bn0_s = bn0_s_ref[...]
    bn0_b = bn0_b_ref[...]
    bn1_s = bn1_s_ref[...]
    b1 = b1_ref[...]
    w0 = w0_ref[...]
    w1 = w1_ref[...]

    def im2col(a):
        """(C, HWp) -> (sz*sz*C, HWp): sz*sz spatially shifted copies,
        tap-major / channel-minor.  Shifts are circular rolls on the lane
        axis; the precomputed masks restore SAME zero padding (both the
        horizontal row-wrap and the vertical wrap of the circular roll)."""
        # TODO(synk): when C % 16 == 0 build the taps directly in bf16 to
        #             halve this intermediate (skipped here: C = 8).
        pieces = []
        tap = 0
        for dy in range(sz):
            for dx in range(sz):
                sy, sx = dy - p, dx - p
                s = sy * W + sx                      # flat row-major shift
                if s == 0:
                    shifted = a                      # centre tap: mask == 1
                else:
                    shifted = pltpu.roll(a, shift=(-s) % HWp, axis=1)
                    shifted = shifted * masks[tap:tap + 1, :]
                pieces.append(shifted)
                tap += 1
        return jnp.concatenate(pieces, axis=0)       # (sz*sz*C, HWp)

    def one_image(b, carry):
        # ---- stage 0: BN0 + ReLU (f32 elementwise) ----
        x = x_ref[b].astype(jnp.float32)                          # (Cin_p, HWp)
        a0 = jnp.maximum(x * bn0_s + bn0_b, 0.0)

        # ---- conv0 as one im2col matmul; bn1 scale folded into w0 ----
        d0 = jnp.dot(w0, im2col(a0).astype(mm_dtype),
                     preferred_element_type=jnp.float32)          # (Cout, HWp)

        # ---- skip + style + conv0 bias + BN1 + ReLU, folded to 3 VPU ops ----
        yb = y_ref[b].astype(jnp.float32)
        a1 = jnp.maximum(d0 + bn1_s * yb + bias1_ref[b], 0.0)

        # ---- conv1 ----
        o = jnp.dot(w1, im2col(a1).astype(mm_dtype),
                    preferred_element_type=jnp.float32) + b1
        out_ref[b] = o.astype(out_ref.dtype)
        return carry

    jax.lax.fori_loop(0, B, one_image, None, unroll=True)


def convup_forward(x_nchw, y_nchw, style, params, *, mm_dtype=jnp.bfloat16):
    """x_nchw: (N,Cin,H,W), y_nchw: (N,Cout,H,W), style: (N,Sc) -> (N,Cout,H,W).

    mm_dtype=bf16 (default): bf16 matmul operands + bf16 x/y I/O, f32
    accumulation and f32 elementwise math.  mm_dtype=f32: full-precision path.
    """
    N, Cin, H, W = x_nchw.shape
    sz = params["w0"].shape[0]
    Cout = params["w0"].shape[3]
    p = sz // 2
    HW = H * W
    HWp = _round_up(HW, 128)          # lane-dense output stores
    Cin_p = _round_up(Cin, 8)         # sublane-aligned im2col pieces

    f32 = jnp.float32
    io_dtype = jnp.bfloat16 if mm_dtype == jnp.bfloat16 else jnp.float32

    # ---- activations: channels-first, flattened spatial axis on lanes ----
    x = x_nchw.reshape(N, Cin, HW).astype(io_dtype)
    y = y_nchw.reshape(N, Cout, HW).astype(io_dtype)
    if HWp != HW:
        x = jnp.pad(x, ((0, 0), (0, 0), (0, HWp - HW)))
        y = jnp.pad(y, ((0, 0), (0, 0), (0, HWp - HW)))
    if Cin_p != Cin:
        x = jnp.pad(x, ((0, 0), (0, Cin_p - Cin), (0, 0)))

    # ---- BN0 params, zero-padded to the sublane-aligned channel count ----
    bn0_s = jnp.pad(params["bn0_s"].astype(f32), (0, Cin_p - Cin)).reshape(Cin_p, 1)
    bn0_b = jnp.pad(params["bn0_b"].astype(f32), (0, Cin_p - Cin)).reshape(Cin_p, 1)
    bn1_s = params["bn1_s"].astype(f32)
    bn1_b = params["bn1_b"].astype(f32)

    # ---- style projection (one small XLA GEMM) + BN1 affine fold ----
    feat = style.astype(f32) @ params["fw"].astype(f32) + params["fb"].astype(f32)
    bias1 = (bn1_s[None, :] * (params["b0"].astype(f32)[None, :] + feat)
             + bn1_b[None, :]).reshape(N, Cout, 1)                # per (n, co)

    # ---- conv weights as im2col matrices (tap-major, channel-minor) ----
    # w2d[co, (dy*sz+dx)*C + ci] = w[dy,dx,ci,co]; bn1_s folded into conv0.
    w0 = params["w0"].astype(f32)
    if Cin_p != Cin:
        w0 = jnp.pad(w0, ((0, 0), (0, 0), (0, Cin_p - Cin), (0, 0)))
    w0_2d = jnp.transpose(w0, (3, 0, 1, 2)).reshape(Cout, sz * sz * Cin_p)
    w0_2d = (bn1_s[:, None] * w0_2d).astype(mm_dtype)
    w1_2d = jnp.transpose(params["w1"].astype(f32),
                          (3, 0, 1, 2)).reshape(Cout, sz * sz * Cout).astype(mm_dtype)
    b1 = params["b1"].astype(f32).reshape(Cout, 1)
    bn1_s_col = bn1_s.reshape(Cout, 1)

    # ---- per-tap SAME-padding masks (cover the circular roll's row wrap
    #      and any spatial pad lanes), computed once on the host ----
    idx = np.arange(HWp)
    row, col, real = idx // W, idx % W, idx < HW
    mrows = []
    for dy in range(sz):
        for dx in range(sz):
            sy, sx = dy - p, dx - p
            m = (real & (row + sy >= 0) & (row + sy < H)
                      & (col + sx >= 0) & (col + sx < W))
            mrows.append(m)
    masks = jnp.asarray(np.stack(mrows).astype(np.float32))        # (sz*sz, HWp)

    # ---- images per grid step: biggest divisor of N keeping blocks ~2 MiB ----
    per_image = HWp * (Cin_p * x.dtype.itemsize + Cout * y.dtype.itemsize
                       + Cout * 4) + Cout * 4
    max_b = max(1, min(N, (2 * 1024 * 1024) // max(per_image, 1)))
    B = next(b for b in range(max_b, 0, -1) if N % b == 0)

    # ---- VMEM budget from actual sizes: double-buffered blocks + resident
    #      params + in-kernel im2col intermediates; clamp to [32, 64] MiB ----
    fixed = int(masks.size * 4 + (Cin_p * 2 + Cout * 3) * 4
                + (w0_2d.size + w1_2d.size) * w0_2d.dtype.itemsize)
    interm = HWp * (sz * sz * (Cin_p + Cout) * 6 + (Cin_p + 3 * Cout) * 4)
    est = 2 * B * per_image + 2 * fixed + 2 * interm
    vmem_limit = int(min(max(2 * est, 32 * 1024 * 1024), 64 * 1024 * 1024))

    def fixed_spec(shape):
        return pl.BlockSpec(shape, lambda n, _s=len(shape): (0,) * _s)

    kernel = functools.partial(convup_kernel, W=W, HWp=HWp, sz=sz, B=B,
                               mm_dtype=mm_dtype)

    grid_spec = pltpu.PrefetchScalarGridSpec(
        num_scalar_prefetch=0,
        grid=(N // B,),
        in_specs=[
            pl.BlockSpec((B, Cin_p, HWp), lambda n: (n, 0, 0)),   # x
            pl.BlockSpec((B, Cout, HWp), lambda n: (n, 0, 0)),    # y (skip)
            pl.BlockSpec((B, Cout, 1), lambda n: (n, 0, 0)),      # folded bias1
            fixed_spec((sz * sz, HWp)),                           # tap masks
            fixed_spec((Cin_p, 1)),                               # bn0 scale
            fixed_spec((Cin_p, 1)),                               # bn0 bias
            fixed_spec((Cout, sz * sz * Cin_p)),                  # conv0 w (folded)
            fixed_spec((Cout, 1)),                                # bn1 scale (for y)
            fixed_spec((Cout, sz * sz * Cout)),                   # conv1 w
            fixed_spec((Cout, 1)),                                # conv1 bias
        ],
        out_specs=pl.BlockSpec((B, Cout, HWp), lambda n: (n, 0, 0)),
    )

    out = pl.pallas_call(
        kernel,
        out_shape=jax.ShapeDtypeStruct((N, Cout, HWp), jnp.float32),
        grid_spec=grid_spec,
        compiler_params=pltpu.CompilerParams(
            dimension_semantics=("parallel",),
            vmem_limit_bytes=vmem_limit),
    )(x, y, bias1, masks, bn0_s, bn0_b, w0_2d, bn1_s_col, w1_2d, b1)

    if HWp != HW:
        out = out[:, :, :HW]
    return out.reshape(N, Cout, H, W)   # free reshape back to NCHW


def convup_reference(x_nchw, y_nchw, style, params):
    """Pure-JAX reference (same math, XLA conv) for verification."""
    sz = params["w0"].shape[0]
    p = sz // 2

    def bn_relu(x, s, b):
        return jnp.maximum(x * s[None, :, None, None] + b[None, :, None, None], 0.0)

    def conv(x, w_hwio, b):
        o = jax.lax.conv_general_dilated(
            x, w_hwio, window_strides=(1, 1), padding=[(p, p), (p, p)],
            dimension_numbers=("NCHW", "HWIO", "NCHW"))
        return o + b[None, :, None, None]

    t = conv(bn_relu(x_nchw, params["bn0_s"], params["bn0_b"]), params["w0"], params["b0"])
    feat = style @ params["fw"] + params["fb"]
    u = t + y_nchw + feat[:, :, None, None]
    return conv(bn_relu(u, params["bn1_s"], params["bn1_b"]), params["w1"], params["b1"])


if __name__ == "__main__":
    N, Cin, Cout, Sc, H, W, sz = 2, 4, 8, 32, 16, 16, 3
    key = jax.random.PRNGKey(0)
    ks = jax.random.split(key, 18)

    x = jax.random.normal(ks[0], (N, Cin, H, W), jnp.float32)
    y = jax.random.normal(ks[1], (N, Cout, H, W), jnp.float32)
    style = jax.random.normal(ks[2], (N, Sc), jnp.float32)

    # BatchNorm0 (inference mode: fold gamma/beta/mean/var into scale & bias)
    g0 = 1.0 + 0.1 * jax.random.normal(ks[3], (Cin,), jnp.float32)
    be0 = 0.1 * jax.random.normal(ks[4], (Cin,), jnp.float32)
    m0 = 0.1 * jax.random.normal(ks[5], (Cin,), jnp.float32)
    v0 = 1.0 + 0.1 * jax.random.uniform(ks[6], (Cin,), jnp.float32)
    bn0_s = g0 / jnp.sqrt(v0 + 1e-5)
    bn0_b = be0 - m0 * bn0_s

    w0 = 0.1 * jax.random.normal(ks[7], (sz, sz, Cin, Cout), jnp.float32)   # HWIO
    b0 = 0.1 * jax.random.normal(ks[8], (Cout,), jnp.float32)

    fw = 0.1 * jax.random.normal(ks[9], (Sc, Cout), jnp.float32)
    fb = 0.1 * jax.random.normal(ks[10], (Cout,), jnp.float32)

    # BatchNorm1
    g1 = 1.0 + 0.1 * jax.random.normal(ks[11], (Cout,), jnp.float32)
    be1 = 0.1 * jax.random.normal(ks[12], (Cout,), jnp.float32)
    m1 = 0.1 * jax.random.normal(ks[13], (Cout,), jnp.float32)
    v1 = 1.0 + 0.1 * jax.random.uniform(ks[14], (Cout,), jnp.float32)
    bn1_s = g1 / jnp.sqrt(v1 + 1e-5)
    bn1_b = be1 - m1 * bn1_s

    w1 = 0.1 * jax.random.normal(ks[15], (sz, sz, Cout, Cout), jnp.float32)  # HWIO
    b1 = 0.1 * jax.random.normal(ks[16], (Cout,), jnp.float32)

    params = dict(bn0_s=bn0_s, bn0_b=bn0_b, w0=w0, b0=b0,
                  fw=fw, fb=fb,
                  bn1_s=bn1_s, bn1_b=bn1_b, w1=w1, b1=b1)

    ref = convup_reference(x, y, style, params)

    # Structural check: full f32 path, tight tolerance.
    out_f32 = jax.block_until_ready(
        convup_forward(x, y, style, params, mm_dtype=jnp.float32))
    np.testing.assert_allclose(np.asarray(out_f32), np.asarray(ref),
                               atol=1e-3, rtol=1e-3)

    # Default performance path: bf16 matmul operands + bf16 x/y I/O
    # (expected bf16 rounding => looser tolerance, per review).
    out = jax.block_until_ready(convup_forward(x, y, style, params))
    np.testing.assert_allclose(np.asarray(out), np.asarray(ref),
                               atol=5e-2, rtol=5e-2)

    print("KERNEL_OK")
</pallas_src>

<mosaic_0001>
module attributes {stable_mosaic.version = 11 : i64} {
  func.func @convup_kernel(%arg0: i32, %arg1: memref<2x8x256xf32, #tpu.memory_space<vmem>>, %arg2: memref<2x8x256xf32, #tpu.memory_space<vmem>>, %arg3: memref<2x8x1xf32, #tpu.memory_space<vmem>>, %arg4: memref<9x256xf32, #tpu.memory_space<vmem>>, %arg5: memref<8x1xf32, #tpu.memory_space<vmem>>, %arg6: memref<8x1xf32, #tpu.memory_space<vmem>>, %arg7: memref<8x72xf32, #tpu.memory_space<vmem>>, %arg8: memref<8x1xf32, #tpu.memory_space<vmem>>, %arg9: memref<8x72xf32, #tpu.memory_space<vmem>>, %arg10: memref<8x1xf32, #tpu.memory_space<vmem>>, %arg11: memref<2x8x256xf32, #tpu.memory_space<vmem>>) attributes {dimension_semantics = [#tpu.dimension_semantics<parallel>], iteration_bounds = array<i64: 1>, scalar_prefetch = 0 : i64, scratch_operands = 0 : i64, tpu.core_type = #tpu.core_type<tc>, window_params = [{transform_indices = @transform_0, window_bounds = array<i64: 2, 8, 256>}, {transform_indices = @transform_1, window_bounds = array<i64: 2, 8, 256>}, {transform_indices = @transform_2, window_bounds = array<i64: 2, 8, 1>}, {pipeline_mode = #tpu.pipeline_mode<synchronous>, transform_indices = @transform_3, window_bounds = array<i64: 9, 256>}, {pipeline_mode = #tpu.pipeline_mode<synchronous>, transform_indices = @transform_4, window_bounds = array<i64: 8, 1>}, {pipeline_mode = #tpu.pipeline_mode<synchronous>, transform_indices = @transform_5, window_bounds = array<i64: 8, 1>}, {pipeline_mode = #tpu.pipeline_mode<synchronous>, transform_indices = @transform_6, window_bounds = array<i64: 8, 72>}, {pipeline_mode = #tpu.pipeline_mode<synchronous>, transform_indices = @transform_7, window_bounds = array<i64: 8, 1>}, {pipeline_mode = #tpu.pipeline_mode<synchronous>, transform_indices = @transform_8, window_bounds = array<i64: 8, 72>}, {pipeline_mode = #tpu.pipeline_mode<synchronous>, transform_indices = @transform_9, window_bounds = array<i64: 8, 1>}, {transform_indices = @transform_10, window_bounds = array<i64: 2, 8, 256>}]} {
    %c0 = arith.constant 0 : index
    %c0_0 = arith.constant 0 : index
    %0 = vector.load %arg4[%c0, %c0_0] : memref<9x256xf32, #tpu.memory_space<vmem>>, vector<9x256xf32>
    %c0_1 = arith.constant 0 : index
    %c0_2 = arith.constant 0 : index
    %1 = vector.load %arg5[%c0_1, %c0_2] : memref<8x1xf32, #tpu.memory_space<vmem>>, vector<8x1xf32>
    %c0_3 = arith.constant 0 : index
    %c0_4 = arith.constant 0 : index
    %2 = vector.load %arg6[%c0_3, %c0_4] : memref<8x1xf32, #tpu.memory_space<vmem>>, vector<8x1xf32>
    %c0_5 = arith.constant 0 : index
    %c0_6 = arith.constant 0 : index
    %3 = vector.load %arg8[%c0_5, %c0_6] : memref<8x1xf32, #tpu.memory_space<vmem>>, vector<8x1xf32>
    %c0_7 = arith.constant 0 : index
    %c0_8 = arith.constant 0 : index
    %4 = vector.load %arg10[%c0_7, %c0_8] : memref<8x1xf32, #tpu.memory_space<vmem>>, vector<8x1xf32>
    %c0_9 = arith.constant 0 : index
    %c0_10 = arith.constant 0 : index
    %5 = vector.load %arg7[%c0_9, %c0_10] : memref<8x72xf32, #tpu.memory_space<vmem>>, vector<8x72xf32>
    %c0_11 = arith.constant 0 : index
    %c0_12 = arith.constant 0 : index
    %6 = vector.load %arg9[%c0_11, %c0_12] : memref<8x72xf32, #tpu.memory_space<vmem>>, vector<8x72xf32>
    %c0_i32 = arith.constant 0 : i32
    %7 = arith.index_cast %c0_i32 : i32 to index
    %c0_13 = arith.constant 0 : index
    %c0_14 = arith.constant 0 : index
    %8 = vector.load %arg1[%7, %c0_13, %c0_14] : memref<2x8x256xf32, #tpu.memory_space<vmem>>, vector<1x8x256xf32>
    %9 = vector.shape_cast %8 : vector<1x8x256xf32> to vector<8x256xf32>
    %10 = vector.broadcast %1 : vector<8x1xf32> to vector<8x256xf32>
    %11 = arith.mulf %9, %10 : vector<8x256xf32>
    %12 = vector.broadcast %2 : vector<8x1xf32> to vector<8x256xf32>
    %13 = arith.addf %11, %12 : vector<8x256xf32>
    %cst = arith.constant 0.000000e+00 : f32
    %14 = vector.broadcast %cst : f32 to vector<8x256xf32>
    %15 = arith.maximumf %13, %14 : vector<8x256xf32>
    %c17_i32 = arith.constant 17 : i32
    %16 = tpu.dynamic_rotate %15 by %c17_i32 dim 1 : vector<8x256xf32>, i32 -> vector<8x256xf32>
    %17 = vector.extract_strided_slice %0 {offsets = [0, 0], sizes = [1, 256], strides = [1, 1]} : vector<9x256xf32> to vector<1x256xf32>
    %18 = vector.broadcast %17 : vector<1x256xf32> to vector<8x256xf32>
    %19 = arith.mulf %16, %18 : vector<8x256xf32>
    %c16_i32 = arith.constant 16 : i32
    %20 = tpu.dynamic_rotate %15 by %c16_i32 dim 1 : vector<8x256xf32>, i32 -> vector<8x256xf32>
    %21 = vector.extract_strided_slice %0 {offsets = [1, 0], sizes = [1, 256], strides = [1, 1]} : vector<9x256xf32> to vector<1x256xf32>
    %22 = vector.broadcast %21 : vector<1x256xf32> to vector<8x256xf32>
    %23 = arith.mulf %20, %22 : vector<8x256xf32>
    %c15_i32 = arith.constant 15 : i32
    %24 = tpu.dynamic_rotate %15 by %c15_i32 dim 1 : vector<8x256xf32>, i32 -> vector<8x256xf32>
    %25 = vector.extract_strided_slice %0 {offsets = [2, 0], sizes = [1, 256], strides = [1, 1]} : vector<9x256xf32> to vector<1x256xf32>
    %26 = vector.broadcast %25 : vector<1x256xf32> to vector<8x256xf32>
    %27 = arith.mulf %24, %26 : vector<8x256xf32>
    %c1_i32 = arith.constant 1 : i32
    %28 = tpu.dynamic_rotate %15 by %c1_i32 dim 1 : vector<8x256xf32>, i32 -> vector<8x256xf32>
    %29 = vector.extract_strided_slice %0 {offsets = [3, 0], sizes = [1, 256], strides = [1, 1]} : vector<9x256xf32> to vector<1x256xf32>
    %30 = vector.broadcast %29 : vector<1x256xf32> to vector<8x256xf32>
    %31 = arith.mulf %28, %30 : vector<8x256xf32>
    %c255_i32 = arith.constant 255 : i32
    %32 = tpu.dynamic_rotate %15 by %c255_i32 dim 1 : vector<8x256xf32>, i32 -> vector<8x256xf32>
    %33 = vector.extract_strided_slice %0 {offsets = [5, 0], sizes = [1, 256], strides = [1, 1]} : vector<9x256xf32> to vector<1x256xf32>
    %34 = vector.broadcast %33 : vector<1x256xf32> to vector<8x256xf32>
    %35 = arith.mulf %32, %34 : vector<8x256xf32>
    %c241_i32 = arith.constant 241 : i32
    %36 = tpu.dynamic_rotate %15 by %c241_i32 dim 1 : vector<8x256xf32>, i32 -> vector<8x256xf32>
    %37 = vector.extract_strided_slice %0 {offsets = [6, 0], sizes = [1, 256], strides = [1, 1]} : vector<9x256xf32> to vector<1x256xf32>
    %38 = vector.broadcast %37 : vector<1x256xf32> to vector<8x256xf32>
    %39 = arith.mulf %36, %38 : vector<8x256xf32>
    %c240_i32 = arith.constant 240 : i32
    %40 = tpu.dynamic_rotate %15 by %c240_i32 dim 1 : vector<8x256xf32>, i32 -> vector<8x256xf32>
    %41 = vector.extract_strided_slice %0 {offsets = [7, 0], sizes = [1, 256], strides = [1, 1]} : vector<9x256xf32> to vector<1x256xf32>
    %42 = vector.broadcast %41 : vector<1x256xf32> to vector<8x256xf32>
    %43 = arith.mulf %40, %42 : vector<8x256xf32>
    %c239_i32 = arith.constant 239 : i32
    %44 = tpu.dynamic_rotate %15 by %c239_i32 dim 1 : vector<8x256xf32>, i32 -> vector<8x256xf32>
    %45 = vector.extract_strided_slice %0 {offsets = [8, 0], sizes = [1, 256], strides = [1, 1]} : vector<9x256xf32> to vector<1x256xf32>
    %46 = vector.broadcast %45 : vector<1x256xf32> to vector<8x256xf32>
    %47 = arith.mulf %44, %46 : vector<8x256xf32>
    %48 = tpu.concatenate %19, %23, %27, %31, %15, %35, %39, %43, %47 in 0 : vector<8x256xf32>, vector<8x256xf32>, vector<8x256xf32>, vector<8x256xf32>, vector<8x256xf32>, vector<8x256xf32>, vector<8x256xf32>, vector<8x256xf32>, vector<8x256xf32> -> vector<72x256xf32>
    %cst_15 = arith.constant dense<0.000000e+00> : vector<8x256xf32>
    %49 = tpu.matmul %5, %48, %cst_15 {dimension_numbers = #tpu.dot_dimension_numbers<[1], [0], [0], [1], [0, 0, 1, 1], [], []>} : vector<8x72xf32>, vector<72x256xf32>, vector<8x256xf32> -> vector<8x256xf32>
    %50 = arith.index_cast %c0_i32 : i32 to index
    %c0_16 = arith.constant 0 : index
    %c0_17 = arith.constant 0 : index
    %51 = vector.load %arg2[%50, %c0_16, %c0_17] : memref<2x8x256xf32, #tpu.memory_space<vmem>>, vector<1x8x256xf32>
    %52 = vector.shape_cast %51 : vector<1x8x256xf32> to vector<8x256xf32>
    %53 = vector.broadcast %3 : vector<8x1xf32> to vector<8x256xf32>
    %54 = arith.mulf %53, %52 : vector<8x256xf32>
    %55 = arith.addf %49, %54 : vector<8x256xf32>
    %56 = arith.index_cast %c0_i32 : i32 to index
    %c0_18 = arith.constant 0 : index
    %c0_19 = arith.constant 0 : index
    %57 = vector.load %arg3[%56, %c0_18, %c0_19] : memref<2x8x1xf32, #tpu.memory_space<vmem>>, vector<1x8x1xf32>
    %58 = vector.shape_cast %57 : vector<1x8x1xf32> to vector<8x1xf32>
    %59 = vector.broadcast %58 : vector<8x1xf32> to vector<8x256xf32>
    %60 = arith.addf %55, %59 : vector<8x256xf32>
    %cst_20 = arith.constant 0.000000e+00 : f32
    %61 = vector.broadcast %cst_20 : f32 to vector<8x256xf32>
    %62 = arith.maximumf %60, %61 : vector<8x256xf32>
    %c17_i32_21 = arith.constant 17 : i32
    %63 = tpu.dynamic_rotate %62 by %c17_i32_21 dim 1 : vector<8x256xf32>, i32 -> vector<8x256xf32>
    %64 = vector.extract_strided_slice %0 {offsets = [0, 0], sizes = [1, 256], strides = [1, 1]} : vector<9x256xf32> to vector<1x256xf32>
    %65 = vector.broadcast %64 : vector<1x256xf32> to vector<8x256xf32>
    %66 = arith.mulf %63, %65 : vector<8x256xf32>
    %c16_i32_22 = arith.constant 16 : i32
    %67 = tpu.dynamic_rotate %62 by %c16_i32_22 dim 1 : vector<8x256xf32>, i32 -> vector<8x256xf32>
    %68 = vector.extract_strided_slice %0 {offsets = [1, 0], sizes = [1, 256], strides = [1, 1]} : vector<9x256xf32> to vector<1x256xf32>
    %69 = vector.broadcast %68 : vector<1x256xf32> to vector<8x256xf32>
    %70 = arith.mulf %67, %69 : vector<8x256xf32>
    %c15_i32_23 = arith.constant 15 : i32
    %71 = tpu.dynamic_rotate %62 by %c15_i32_23 dim 1 : vector<8x256xf32>, i32 -> vector<8x256xf32>
    %72 = vector.extract_strided_slice %0 {offsets = [2, 0], sizes = [1, 256], strides = [1, 1]} : vector<9x256xf32> to vector<1x256xf32>
    %73 = vector.broadcast %72 : vector<1x256xf32> to vector<8x256xf32>
    %74 = arith.mulf %71, %73 : vector<8x256xf32>
    %c1_i32_24 = arith.constant 1 : i32
    %75 = tpu.dynamic_rotate %62 by %c1_i32_24 dim 1 : vector<8x256xf32>, i32 -> vector<8x256xf32>
    %76 = vector.extract_strided_slice %0 {offsets = [3, 0], sizes = [1, 256], strides = [1, 1]} : vector<9x256xf32> to vector<1x256xf32>
    %77 = vector.broadcast %76 : vector<1x256xf32> to vector<8x256xf32>
    %78 = arith.mulf %75, %77 : vector<8x256xf32>
    %c255_i32_25 = arith.constant 255 : i32
    %79 = tpu.dynamic_rotate %62 by %c255_i32_25 dim 1 : vector<8x256xf32>, i32 -> vector<8x256xf32>
    %80 = vector.extract_strided_slice %0 {offsets = [5, 0], sizes = [1, 256], strides = [1, 1]} : vector<9x256xf32> to vector<1x256xf32>
    %81 = vector.broadcast %80 : vector<1x256xf32> to vector<8x256xf32>
    %82 = arith.mulf %79, %81 : vector<8x256xf32>
    %c241_i32_26 = arith.constant 241 : i32
    %83 = tpu.dynamic_rotate %62 by %c241_i32_26 dim 1 : vector<8x256xf32>, i32 -> vector<8x256xf32>
    %84 = vector.extract_strided_slice %0 {offsets = [6, 0], sizes = [1, 256], strides = [1, 1]} : vector<9x256xf32> to vector<1x256xf32>
    %85 = vector.broadcast %84 : vector<1x256xf32> to vector<8x256xf32>
    %86 = arith.mulf %83, %85 : vector<8x256xf32>
    %c240_i32_27 = arith.constant 240 : i32
    %87 = tpu.dynamic_rotate %62 by %c240_i32_27 dim 1 : vector<8x256xf32>, i32 -> vector<8x256xf32>
    %88 = vector.extract_strided_slice %0 {offsets = [7, 0], sizes = [1, 256], strides = [1, 1]} : vector<9x256xf32> to vector<1x256xf32>
    %89 = vector.broadcast %88 : vector<1x256xf32> to vector<8x256xf32>
    %90 = arith.mulf %87, %89 : vector<8x256xf32>
    %c239_i32_28 = arith.constant 239 : i32
    %91 = tpu.dynamic_rotate %62 by %c239_i32_28 dim 1 : vector<8x256xf32>, i32 -> vector<8x256xf32>
    %92 = vector.extract_strided_slice %0 {offsets = [8, 0], sizes = [1, 256], strides = [1, 1]} : vector<9x256xf32> to vector<1x256xf32>
    %93 = vector.broadcast %92 : vector<1x256xf32> to vector<8x256xf32>
    %94 = arith.mulf %91, %93 : vector<8x256xf32>
    %95 = tpu.concatenate %66, %70, %74, %78, %62, %82, %86, %90, %94 in 0 : vector<8x256xf32>, vector<8x256xf32>, vector<8x256xf32>, vector<8x256xf32>, vector<8x256xf32>, vector<8x256xf32>, vector<8x256xf32>, vector<8x256xf32>, vector<8x256xf32> -> vector<72x256xf32>
    %cst_29 = arith.constant dense<0.000000e+00> : vector<8x256xf32>
    %96 = tpu.matmul %6, %95, %cst_29 {dimension_numbers = #tpu.dot_dimension_numbers<[1], [0], [0], [1], [0, 0, 1, 1], [], []>} : vector<8x72xf32>, vector<72x256xf32>, vector<8x256xf32> -> vector<8x256xf32>
    %97 = vector.broadcast %4 : vector<8x1xf32> to vector<8x256xf32>
    %98 = arith.addf %96, %97 : vector<8x256xf32>
    %99 = arith.index_cast %c0_i32 : i32 to index
    %c0_30 = arith.constant 0 : index
    %c0_31 = arith.constant 0 : index
    %100 = vector.load %arg11[%99, %c0_30, %c0_31] : memref<2x8x256xf32, #tpu.memory_space<vmem>>, vector<1x8x256xf32>
    %101 = vector.shape_cast %100 : vector<1x8x256xf32> to vector<8x256xf32>
    %102 = vector.shape_cast %98 : vector<8x256xf32> to vector<1x8x256xf32>
    tpu.vector_store %arg11[%99, %c0_30, %c0_31], %102 {strides = array<i32>} : memref<2x8x256xf32, #tpu.memory_space<vmem>>, vector<1x8x256xf32>,
    %c1_i32_32 = arith.constant 1 : i32
    %103 = arith.index_cast %c1_i32_32 : i32 to index
    %c0_33 = arith.constant 0 : index
    %c0_34 = arith.constant 0 : index
    %104 = vector.load %arg1[%103, %c0_33, %c0_34] : memref<2x8x256xf32, #tpu.memory_space<vmem>>, vector<1x8x256xf32>
    %105 = vector.shape_cast %104 : vector<1x8x256xf32> to vector<8x256xf32>
    %106 = vector.broadcast %1 : vector<8x1xf32> to vector<8x256xf32>
    %107 = arith.mulf %105, %106 : vector<8x256xf32>
    %108 = vector.broadcast %2 : vector<8x1xf32> to vector<8x256xf32>
    %109 = arith.addf %107, %108 : vector<8x256xf32>
    %cst_35 = arith.constant 0.000000e+00 : f32
    %110 = vector.broadcast %cst_35 : f32 to vector<8x256xf32>
    %111 = arith.maximumf %109, %110 : vector<8x256xf32>
    %c17_i32_36 = arith.constant 17 : i32
    %112 = tpu.dynamic_rotate %111 by %c17_i32_36 dim 1 : vector<8x256xf32>, i32 -> vector<8x256xf32>
    %113 = vector.extract_strided_slice %0 {offsets = [0, 0], sizes = [1, 256], strides = [1, 1]} : vector<9x256xf32> to vector<1x256xf32>
    %114 = vector.broadcast %113 : vector<1x256xf32> to vector<8x256xf32>
    %115 = arith.mulf %112, %114 : vector<8x256xf32>
    %c16_i32_37 = arith.constant 16 : i32
    %116 = tpu.dynamic_rotate %111 by %c16_i32_37 dim 1 : vector<8x256xf32>, i32 -> vector<8x256xf32>
    %117 = vector.extract_strided_slice %0 {offsets = [1, 0], sizes = [1, 256], strides = [1, 1]} : vector<9x256xf32> to vector<1x256xf32>
    %118 = vector.broadcast %117 : vector<1x256xf32> to vector<8x256xf32>
    %119 = arith.mulf %116, %118 : vector<8x256xf32>
    %c15_i32_38 = arith.constant 15 : i32
    %120 = tpu.dynamic_rotate %111 by %c15_i32_38 dim 1 : vector<8x256xf32>, i32 -> vector<8x256xf32>
    %121 = vector.extract_strided_slice %0 {offsets = [2, 0], sizes = [1, 256], strides = [1, 1]} : vector<9x256xf32> to vector<1x256xf32>
    %122 = vector.broadcast %121 : vector<1x256xf32> to vector<8x256xf32>
    %123 = arith.mulf %120, %122 : vector<8x256xf32>
    %c1_i32_39 = arith.constant 1 : i32
    %124 = tpu.dynamic_rotate %111 by %c1_i32_39 dim 1 : vector<8x256xf32>, i32 -> vector<8x256xf32>
    %125 = vector.extract_strided_slice %0 {offsets = [3, 0], sizes = [1, 256], strides = [1, 1]} : vector<9x256xf32> to vector<1x256xf32>
    %126 = vector.broadcast %125 : vector<1x256xf32> to vector<8x256xf32>
    %127 = arith.mulf %124, %126 : vector<8x256xf32>
    %c255_i32_40 = arith.constant 255 : i32
    %128 = tpu.dynamic_rotate %111 by %c255_i32_40 dim 1 : vector<8x256xf32>, i32 -> vector<8x256xf32>
    %129 = vector.extract_strided_slice %0 {offsets = [5, 0], sizes = [1, 256], strides = [1, 1]} : vector<9x256xf32> to vector<1x256xf32>
    %130 = vector.broadcast %129 : vector<1x256xf32> to vector<8x256xf32>
    %131 = arith.mulf %128, %130 : vector<8x256xf32>
    %c241_i32_41 = arith.constant 241 : i32
    %132 = tpu.dynamic_rotate %111 by %c241_i32_41 dim 1 : vector<8x256xf32>, i32 -> vector<8x256xf32>
    %133 = vector.extract_strided_slice %0 {offsets = [6, 0], sizes = [1, 256], strides = [1, 1]} : vector<9x256xf32> to vector<1x256xf32>
    %134 = vector.broadcast %133 : vector<1x256xf32> to vector<8x256xf32>
    %135 = arith.mulf %132, %134 : vector<8x256xf32>
    %c240_i32_42 = arith.constant 240 : i32
    %136 = tpu.dynamic_rotate %111 by %c240_i32_42 dim 1 : vector<8x256xf32>, i32 -> vector<8x256xf32>
    %137 = vector.extract_strided_slice %0 {offsets = [7, 0], sizes = [1, 256], strides = [1, 1]} : vector<9x256xf32> to vector<1x256xf32>
    %138 = vector.broadcast %137 : vector<1x256xf32> to vector<8x256xf32>
    %139 = arith.mulf %136, %138 : vector<8x256xf32>
    %c239_i32_43 = arith.constant 239 : i32
    %140 = tpu.dynamic_rotate %111 by %c239_i32_43 dim 1 : vector<8x256xf32>, i32 -> vector<8x256xf32>
    %141 = vector.extract_strided_slice %0 {offsets = [8, 0], sizes = [1, 256], strides = [1, 1]} : vector<9x256xf32> to vector<1x256xf32>
    %142 = vector.broadcast %141 : vector<1x256xf32> to vector<8x256xf32>
    %143 = arith.mulf %140, %142 : vector<8x256xf32>
    %144 = tpu.concatenate %115, %119, %123, %127, %111, %131, %135, %139, %143 in 0 : vector<8x256xf32>, vector<8x256xf32>, vector<8x256xf32>, vector<8x256xf32>, vector<8x256xf32>, vector<8x256xf32>, vector<8x256xf32>, vector<8x256xf32>, vector<8x256xf32> -> vector<72x256xf32>
    %cst_44 = arith.constant dense<0.000000e+00> : vector<8x256xf32>
    %145 = tpu.matmul %5, %144, %cst_44 {dimension_numbers = #tpu.dot_dimension_numbers<[1], [0], [0], [1], [0, 0, 1, 1], [], []>} : vector<8x72xf32>, vector<72x256xf32>, vector<8x256xf32> -> vector<8x256xf32>
    %146 = arith.index_cast %c1_i32_32 : i32 to index
    %c0_45 = arith.constant 0 : index
    %c0_46 = arith.constant 0 : index
    %147 = vector.load %arg2[%146, %c0_45, %c0_46] : memref<2x8x256xf32, #tpu.memory_space<vmem>>, vector<1x8x256xf32>
    %148 = vector.shape_cast %147 : vector<1x8x256xf32> to vector<8x256xf32>
    %149 = vector.broadcast %3 : vector<8x1xf32> to vector<8x256xf32>
    %150 = arith.mulf %149, %148 : vector<8x256xf32>
    %151 = arith.addf %145, %150 : vector<8x256xf32>
    %152 = arith.index_cast %c1_i32_32 : i32 to index
    %c0_47 = arith.constant 0 : index
    %c0_48 = arith.constant 0 : index
    %153 = vector.load %arg3[%152, %c0_47, %c0_48] : memref<2x8x1xf32, #tpu.memory_space<vmem>>, vector<1x8x1xf32>
    %154 = vector.shape_cast %153 : vector<1x8x1xf32> to vector<8x1xf32>
    %155 = vector.broadcast %154 : vector<8x1xf32> to vector<8x256xf32>
    %156 = arith.addf %151, %155 : vector<8x256xf32>
    %cst_49 = arith.constant 0.000000e+00 : f32
    %157 = vector.broadcast %cst_49 : f32 to vector<8x256xf32>
    %158 = arith.maximumf %156, %157 : vector<8x256xf32>
    %c17_i32_50 = arith.constant 17 : i32
    %159 = tpu.dynamic_rotate %158 by %c17_i32_50 dim 1 : vector<8x256xf32>, i32 -> vector<8x256xf32>
    %160 = vector.extract_strided_slice %0 {offsets = [0, 0], sizes = [1, 256], strides = [1, 1]} : vector<9x256xf32> to vector<1x256xf32>
    %161 = vector.broadcast %160 : vector<1x256xf32> to vector<8x256xf32>
    %162 = arith.mulf %159, %161 : vector<8x256xf32>
    %c16_i32_51 = arith.constant 16 : i32
    %163 = tpu.dynamic_rotate %158 by %c16_i32_51 dim 1 : vector<8x256xf32>, i32 -> vector<8x256xf32>
    %164 = vector.extract_strided_slice %0 {offsets = [1, 0], sizes = [1, 256], strides = [1, 1]} : vector<9x256xf32> to vector<1x256xf32>
    %165 = vector.broadcast %164 : vector<1x256xf32> to vector<8x256xf32>
    %166 = arith.mulf %163, %165 : vector<8x256xf32>
    %c15_i32_52 = arith.constant 15 : i32
    %167 = tpu.dynamic_rotate %158 by %c15_i32_52 dim 1 : vector<8x256xf32>, i32 -> vector<8x256xf32>
    %168 = vector.extract_strided_slice %0 {offsets = [2, 0], sizes = [1, 256], strides = [1, 1]} : vector<9x256xf32> to vector<1x256xf32>
    %169 = vector.broadcast %168 : vector<1x256xf32> to vector<8x256xf32>
    %170 = arith.mulf %167, %169 : vector<8x256xf32>
    %c1_i32_53 = arith.constant 1 : i32
    %171 = tpu.dynamic_rotate %158 by %c1_i32_53 dim 1 : vector<8x256xf32>, i32 -> vector<8x256xf32>
    %172 = vector.extract_strided_slice %0 {offsets = [3, 0], sizes = [1, 256], strides = [1, 1]} : vector<9x256xf32> to vector<1x256xf32>
    %173 = vector.broadcast %172 : vector<1x256xf32> to vector<8x256xf32>
    %174 = arith.mulf %171, %173 : vector<8x256xf32>
    %c255_i32_54 = arith.constant 255 : i32
    %175 = tpu.dynamic_rotate %158 by %c255_i32_54 dim 1 : vector<8x256xf32>, i32 -> vector<8x256xf32>
    %176 = vector.extract_strided_slice %0 {offsets = [5, 0], sizes = [1, 256], strides = [1, 1]} : vector<9x256xf32> to vector<1x256xf32>
    %177 = vector.broadcast %176 : vector<1x256xf32> to vector<8x256xf32>
    %178 = arith.mulf %175, %177 : vector<8x256xf32>
    %c241_i32_55 = arith.constant 241 : i32
    %179 = tpu.dynamic_rotate %158 by %c241_i32_55 dim 1 : vector<8x256xf32>, i32 -> vector<8x256xf32>
    %180 = vector.extract_strided_slice %0 {offsets = [6, 0], sizes = [1, 256], strides = [1, 1]} : vector<9x256xf32> to vector<1x256xf32>
    %181 = vector.broadcast %180 : vector<1x256xf32> to vector<8x256xf32>
    %182 = arith.mulf %179, %181 : vector<8x256xf32>
    %c240_i32_56 = arith.constant 240 : i32
    %183 = tpu.dynamic_rotate %158 by %c240_i32_56 dim 1 : vector<8x256xf32>, i32 -> vector<8x256xf32>
    %184 = vector.extract_strided_slice %0 {offsets = [7, 0], sizes = [1, 256], strides = [1, 1]} : vector<9x256xf32> to vector<1x256xf32>
    %185 = vector.broadcast %184 : vector<1x256xf32> to vector<8x256xf32>
    %186 = arith.mulf %183, %185 : vector<8x256xf32>
    %c239_i32_57 = arith.constant 239 : i32
    %187 = tpu.dynamic_rotate %158 by %c239_i32_57 dim 1 : vector<8x256xf32>, i32 -> vector<8x256xf32>
    %188 = vector.extract_strided_slice %0 {offsets = [8, 0], sizes = [1, 256], strides = [1, 1]} : vector<9x256xf32> to vector<1x256xf32>
    %189 = vector.broadcast %188 : vector<1x256xf32> to vector<8x256xf32>
    %190 = arith.mulf %187, %189 : vector<8x256xf32>
    %191 = tpu.concatenate %162, %166, %170, %174, %158, %178, %182, %186, %190 in 0 : vector<8x256xf32>, vector<8x256xf32>, vector<8x256xf32>, vector<8x256xf32>, vector<8x256xf32>, vector<8x256xf32>, vector<8x256xf32>, vector<8x256xf32>, vector<8x256xf32> -> vector<72x256xf32>
    %cst_58 = arith.constant dense<0.000000e+00> : vector<8x256xf32>
    %192 = tpu.matmul %6, %191, %cst_58 {dimension_numbers = #tpu.dot_dimension_numbers<[1], [0], [0], [1], [0, 0, 1, 1], [], []>} : vector<8x72xf32>, vector<72x256xf32>, vector<8x256xf32> -> vector<8x256xf32>
    %193 = vector.broadcast %4 : vector<8x1xf32> to vector<8x256xf32>
    %194 = arith.addf %192, %193 : vector<8x256xf32>
    %195 = arith.index_cast %c1_i32_32 : i32 to index
    %c0_59 = arith.constant 0 : index
    %c0_60 = arith.constant 0 : index
    %196 = vector.load %arg11[%195, %c0_59, %c0_60] : memref<2x8x256xf32, #tpu.memory_space<vmem>>, vector<1x8x256xf32>
    %197 = vector.shape_cast %196 : vector<1x8x256xf32> to vector<8x256xf32>
    %198 = vector.shape_cast %194 : vector<8x256xf32> to vector<1x8x256xf32>
    tpu.vector_store %arg11[%195, %c0_59, %c0_60], %198 {strides = array<i32>} : memref<2x8x256xf32, #tpu.memory_space<vmem>>, vector<1x8x256xf32>,
    %c2_i32 = arith.constant 2 : i32
    return
  }
  func.func @transform_0(%arg0: i32) -> (i32, i32, i32) {
    %c0_i32 = arith.constant 0 : i32
    %c0_i32_0 = arith.constant 0 : i32
    %c0_i32_1 = arith.constant 0 : i32
    return %arg0, %c0_i32, %c0_i32_0 : i32, i32, i32
  }
  func.func @transform_1(%arg0: i32) -> (i32, i32, i32) {
    %c0_i32 = arith.constant 0 : i32
    %c0_i32_0 = arith.constant 0 : i32
    %c0_i32_1 = arith.constant 0 : i32
    return %arg0, %c0_i32, %c0_i32_0 : i32, i32, i32
  }
  func.func @transform_2(%arg0: i32) -> (i32, i32, i32) {
    %c0_i32 = arith.constant 0 : i32
    %c0_i32_0 = arith.constant 0 : i32
    %c0_i32_1 = arith.constant 0 : i32
    return %arg0, %c0_i32, %c0_i32_0 : i32, i32, i32
  }
  func.func @transform_3(%arg0: i32) -> (i32, i32) {
    %c0_i32 = arith.constant 0 : i32
    %c0_i32_0 = arith.constant 0 : i32
    %c0_i32_1 = arith.constant 0 : i32
    return %c0_i32, %c0_i32_0 : i32, i32
  }
  func.func @transform_4(%arg0: i32) -> (i32, i32) {
    %c0_i32 = arith.constant 0 : i32
    %c0_i32_0 = arith.constant 0 : i32
    %c0_i32_1 = arith.constant 0 : i32
    return %c0_i32, %c0_i32_0 : i32, i32
  }
  func.func @transform_5(%arg0: i32) -> (i32, i32) {
    %c0_i32 = arith.constant 0 : i32
    %c0_i32_0 = arith.constant 0 : i32
    %c0_i32_1 = arith.constant 0 : i32
    return %c0_i32, %c0_i32_0 : i32, i32
  }
  func.func @transform_6(%arg0: i32) -> (i32, i32) {
    %c0_i32 = arith.constant 0 : i32
    %c0_i32_0 = arith.constant 0 : i32
    %c0_i32_1 = arith.constant 0 : i32
    return %c0_i32, %c0_i32_0 : i32, i32
  }
  func.func @transform_7(%arg0: i32) -> (i32, i32) {
    %c0_i32 = arith.constant 0 : i32
    %c0_i32_0 = arith.constant 0 : i32
    %c0_i32_1 = arith.constant 0 : i32
    return %c0_i32, %c0_i32_0 : i32, i32
  }
  func.func @transform_8(%arg0: i32) -> (i32, i32) {
    %c0_i32 = arith.constant 0 : i32
    %c0_i32_0 = arith.constant 0 : i32
    %c0_i32_1 = arith.constant 0 : i32
    return %c0_i32, %c0_i32_0 : i32, i32
  }
  func.func @transform_9(%arg0: i32) -> (i32, i32) {
    %c0_i32 = arith.constant 0 : i32
    %c0_i32_0 = arith.constant 0 : i32
    %c0_i32_1 = arith.constant 0 : i32
    return %c0_i32, %c0_i32_0 : i32, i32
  }
  func.func @transform_10(%arg0: i32) -> (i32, i32, i32) {
    %c0_i32 = arith.constant 0 : i32
    %c0_i32_0 = arith.constant 0 : i32
    %c0_i32_1 = arith.constant 0 : i32
    return %arg0, %c0_i32, %c0_i32_0 : i32, i32, i32
  }
}

</mosaic_0001>

<bundles_post_ra>
// kernel: tpu_custom_call.1
= control target key start
LH: loop header
LB: loop body
LE: loop exit
PB: predicated region body
PF: predicated region fallthrough
CT: control target
= control target key end

     0   :  { %15 = vsyncpa [#allocation3], 0  ;;  %s1481_s0 = inlined_call_operand.vmem [shape: f32[2,8,256], index: 0, kind: input, shape index: {}]   ;;  %s1482_s1 = inlined_call_operand.hbm [shape: f32[2,8,256], index: 1, kind: input, shape index: {}]   ;;  %s1483_s2 = inlined_call_operand.vmem [shape: f32[2,8,1], index: 2, kind: input, shape index: {}]   ;;  %s1484_s3 = inlined_call_operand.vmem [shape: f32[9,256], index: 3, kind: input, shape index: {}]   ;;  %s1485_s4 = inlined_call_operand.vmem [shape: f32[8,1], index: 4, kind: input, shape index: {}]   ;;  %s1486_s5 = inlined_call_operand.vmem [shape: f32[8,1], index: 5, kind: input, shape index: {}]   ;;  %s1487_s6 = inlined_call_operand.vmem [shape: f32[8,72], index: 6, kind: input, shape index: {}]   ;;  %s1488_s7 = inlined_call_operand.vmem [shape: f32[8,1], index: 7, kind: input, shape index: {}]   ;;  %s1489_s8 = inlined_call_operand.vmem [shape: f32[8,72], index: 8, kind: input, shape index: {}]   ;;  %s1490_s9 = inlined_call_operand.vmem [shape: f32[8,1], index: 9, kind: input, shape index: {}]   ;;  %s1491_s10 = inlined_call_operand.hbm [shape: f32[2,8,256], index: 10, kind: output, shape index: {}]  }
   0x1   :  { %16 = vsyncpa [#allocation4], 0  ;;  %s906_s13 = smov [#allocation2]   ;;  %s858_s17 = scalar_lea.hbm %s1482_s1, 512 }
   0x2   :  { %s24_s14 = sshll.u32 %s906_s13, 4  ;;  %p859_p0 = scmp.ne.s32.totalorder %s1482_s1, %s858_s17  ;;  %s25_s14 = int_to_ptr.vmem [resolvable:$true] %s24_s14 }
   0x3   :  { %p862_p1 = scmp.lt.u32.totalorder %s858_s17, %s1482_s1 }
   0x5   :  { %p864_p2 = pnand %p862_p1, %p859_p0 }
   0x7   :  { %867 = shalt.err (!%p864_p2)
}
   0x8   :  { %s868_s22 = scalar_lea.vmem %s25_s14, 512  ;;  %p873_p4 = scmp.lt.s32.totalorder %s25_s14, %s25_s14 }
   0x9   :  { %p869_p3 = scmp.ne.s32.totalorder %s25_s14, %s868_s22  ;;  %p874_p5 = scmp.lt.s32.totalorder %s868_s22, %s868_s22 }
   0xb   :  { %p875_p6 = por %p874_p5, %p873_p4 }
   0xd   :  { %p876_p7 = pnand %p875_p6, %p869_p3 }
   0xf   :  { %879 = shalt.err (!%p876_p7)
}
  0x10   :  { %s907_s23 = smov 256   ;;  %s908_s24 = smov 16  }
  0x11   :  { %30 = dma.hbm_to_vmem [thread:$0]  %s1482_s1, 512, %s25_s14, [#allocation3], %s907_s23, %s907_s23, %s908_s24  }
  0x12   :  { %902 = dma.done.wait [#allocation3], 512  }
  0x13   :  { %903 = vsyncadd [#allocation3], 4294966784  ;;  %v909_v0 = vmov 0   ;;  %v54_v1 = vld [vmem:[%s1485_s4] sm:$0xff]  ;;  %v61_v5 = vld [vmem:[%s1481_s0 + $0x8] sm:$0xff]  ;;  %s910_s4 = smov 17   ;;  %v82_v25 = vlaneseq }
  0x14   :  { %856 = vset.pattern.permute.xlu0 %v909_v0  ;;  %857 = vset.pattern.permute.xlu1 %v909_v0  ;;  %v55_v2 = vld [vmem:[%s1486_s5] sm:$0xff]  ;;  %s911_s5 = smov 15   ;;  %s912_s14 = smov 1   ;;  %v774_v13 = vld [vmem:[%s1481_s0 + $0x10] sm:$0xff]  ;;  %v775_v16 = vld [vmem:[%s1481_s0 + $0x18] sm:$0xff]  ;;  %v917_v17 = vmov 0.0  }
  0x15   :  { %64 = vperm.xlu0 %856, %v54_v1   ;;  %v60_v3 = vld [vmem:[%s1481_s0] sm:$0xff]  ;;  %s913_s15 = smov 127   ;;  %s914_s16 = smov 113   ;;  %293 = vmatprep.mubr.f32.mxu0 %v917_v17  ;;  %v777_v23 = vld [vmem:[%s1483_s2 + $0x8] sm:$0xff]  ;;  %v1090_v26 = vshrl.u32 %v82_v25, 7  ;;  %v1092_v29 = vand.u32 127, %v82_v25 }
  0x16   :  { %s915_s19 = smov 112   ;;  %s916_s20 = smov 111   ;;  %446 = vmatprep.mubr.f32.mxu1 %v917_v17  ;;  %v56_v22 = vld [vmem:[%s1488_s7] sm:$0xff]  ;;  %v1104_v33 = vld [vmem:[%s1484_s3 + $0x8] sm:$0xff]  ;;  %vm225_vm8 = vcmask 588800  }
  0x17   :  { %v300_v24 = vld [vmem:[%s1483_s2] sm:$0xff]  ;;  %v89_v30 = vsub.s32 0, %v1090_v26  ;;  %v106_v32 = vsub.s32 1, %v1090_v26  ;;  %vm84_vm0 = vcmp.lt.s32.totalorder %v1092_v29, 17  ;;  %vm101_vm1 = vcmp.lt.s32.totalorder %v1092_v29, 16 }
  0x18   :  { %v1098_v31 = vld [vmem:[%s1484_s3] sm:$0xff]  ;;  %v123_v46 = vsub.s32 2, %v1090_v26  ;;  %v140_v47 = vsub.s32 3, %v1090_v26  ;;  %vm118_vm2 = vcmp.lt.s32.totalorder %v1092_v29, 15  ;;  %v157_v57 = vsub.s32 5, %v1090_v26 }
  0x19   :  { %71 = vperm.xlu0 %856, %v55_v2   ;;  %v1108_v36 = vrot.slane %v1098_v31, %v89_v30  ;;  %v1112_v37 = vrot.slane %v1098_v31, %v106_v32  ;;  %v1115_v38 = vrot.slane %v1104_v33, %v89_v30  ;;  %v1118_v39 = vrot.slane %v1104_v33, %v106_v32 }
  0x1a   :  { %v1136_v56 = vrot.slane %v1098_v31, %v123_v46  ;;  %v1140_v58 = vrot.slane %v1104_v33, %v123_v46  ;;  %vm135_vm3 = vcmp.lt.s32.totalorder %v1092_v29, 1  ;;  %v1144_v59 = vrot.slane %v1098_v31, %v140_v47 }
  0x1b   :  { %v1147_v60 = vrot.slane %v1104_v33, %v140_v47  ;;  %vm152_vm4 = vcmp.lt.s32.totalorder %v1092_v29, 127  ;;  %vm169_vm5 = vcmp.lt.s32.totalorder %v1092_v29, 113  ;;  %vm186_vm6 = vcmp.lt.s32.totalorder %v1092_v29, 112 }
  0x1c   :  { %vm203_vm7 = vcmp.lt.s32.totalorder %v1092_v29, 111 }
  0x94   :  { %v65_v4 = vpop.permute.xlu0 %64 }
  0x95   :  { %v67_v6 = vmul.f32 %v65_v4, %v60_v3  ;;  %v68_v8 = vmul.f32 %v65_v4, %v61_v5  ;;  %v458_v14 = vmul.f32 %v774_v13, %v65_v4  ;;  %v459_v19 = vmul.f32 %v775_v16, %v65_v4 }
  0x96   :  { %v1159_v3 = vrot.slane %v1098_v31, %v157_v57  ;;  %v1162_v4 = vrot.slane %v1104_v33, %v157_v57 }
  0x98   :  { %v72_v7 = vpop.permute.xlu0 %71 }
  0x99   :  { %v74_v9 = vadd.f32 %v72_v7, %v67_v6  ;;  %v75_v10 = vadd.f32 %v72_v7, %v68_v8  ;;  %v460_v15 = vadd.f32 %v458_v14, %v72_v7  ;;  %v461_v20 = vadd.f32 %v459_v19, %v72_v7 }
  0x9a   :  { %v174_v19 = vsub.s32 6, %v1090_v26 }
  0x9b   :  { %v1001_v11 = vmax.f32 %v74_v9, 0.0  ;;  %v1007_v12 = vmax.f32 %v75_v10, 0.0  ;;  %v1041_v18 = vmax.f32 %v460_v15, 0.0  ;;  %v1051_v21 = vmax.f32 %v461_v20, 0.0 }
  0x9c   :  { %v1180_v30 = vrot.slane %v1098_v31, %v174_v19  ;;  %v1183_v32 = vrot.slane %v1104_v33, %v174_v19 }
  0x9d   :  { %97 = vrot.lane.b32.xlu0 %v1001_v11, %s908_s24  ;;  %78 = vrot.lane.b32.xlu1 %v1001_v11, %s910_s4 }
  0xa1   :  { %114 = vrot.lane.b32.xlu0 %v1001_v11, %s911_s5  ;;  %80 = vrot.lane.b32.xlu1 %v1007_v12, %s910_s4 }
  0xa5   :  { %131 = vrot.lane.b32.xlu0 %v1001_v11, %s912_s14  ;;  %99 = vrot.lane.b32.xlu1 %v1007_v12, %s908_s24 }
  0xa9   :  { %148 = vrot.lane.b32.xlu0 %v1001_v11, %s913_s15  ;;  %116 = vrot.lane.b32.xlu1 %v1007_v12, %s911_s5 }
  0xad   :  { %165 = vrot.lane.b32.xlu0 %v1001_v11, %s914_s16  ;;  %133 = vrot.lane.b32.xlu1 %v1007_v12, %s912_s14 }
  0xb1   :  { %182 = vrot.lane.b32.xlu0 %v1001_v11, %s915_s19  ;;  %150 = vrot.lane.b32.xlu1 %v1007_v12, %s913_s15 }
  0xb5   :  { %199 = vrot.lane.b32.xlu0 %v1001_v11, %s916_s20  ;;  %167 = vrot.lane.b32.xlu1 %v1007_v12, %s914_s16 }
  0xb9   :  { %184 = vrot.lane.b32.xlu1 %v1007_v12, %s915_s19  ;;  %464 = vrot.lane.b32.xlu0 %v1041_v18, %s910_s4 }
  0xbd   :  { %201 = vrot.lane.b32.xlu1 %v1007_v12, %s916_s20  ;;  %472 = vrot.lane.b32.xlu0 %v1041_v18, %s908_s24 }
  0xc1   :  { %466 = vrot.lane.b32.xlu1 %v1051_v21, %s910_s4  ;;  %480 = vrot.lane.b32.xlu0 %v1041_v18, %s911_s5 }
  0xc5   :  { %474 = vrot.lane.b32.xlu1 %v1051_v21, %s908_s24  ;;  %488 = vrot.lane.b32.xlu0 %v1041_v18, %s912_s14 }
  0xc9   :  { %482 = vrot.lane.b32.xlu1 %v1051_v21, %s911_s5  ;;  %496 = vrot.lane.b32.xlu0 %v1041_v18, %s913_s15 }
  0xcd   :  { %490 = vrot.lane.b32.xlu1 %v1051_v21, %s912_s14  ;;  %504 = vrot.lane.b32.xlu0 %v1041_v18, %s914_s16 }
  0xd1   :  { %498 = vrot.lane.b32.xlu1 %v1051_v21, %s913_s15  ;;  %512 = vrot.lane.b32.xlu0 %v1041_v18, %s915_s19 }
  0xd5   :  { %506 = vrot.lane.b32.xlu1 %v1051_v21, %s914_s16  ;;  %520 = vrot.lane.b32.xlu0 %v1041_v18, %s916_s20 }
  0xd9   :  { %514 = vrot.lane.b32.xlu1 %v1051_v21, %s915_s19  ;;  %220 = vperm.xlu0 %856, %v56_v22  }
  0xdd   :  { %522 = vrot.lane.b32.xlu1 %v1051_v21, %s916_s20  ;;  %608 = vperm.xlu0 %856, %v777_v23   ;;  %v191_v23 = vsub.s32 7, %v1090_v26 }
  0xdf   :  { %v1187_v26 = vrot.slane %v1098_v31, %v191_v23 }
  0xe1   :  { %303 = vperm.xlu1 %857, %v300_v24  }
 0x10f   :  { %v98_v27 = vpop.permute.xlu0 %97  ;;  %v79_v28 = vpop.permute.xlu1 %78 }
 0x113   :  { %v115_v34 = vpop.permute.xlu0 %114  ;;  %v81_v35 = vpop.permute.xlu1 %80 }
 0x114   :  { %v85_v40 = vsel %vm84_vm0, %v79_v28, %v81_v35  ;;  %v86_v41 = vsel %vm84_vm0, %v81_v35, %v79_v28 }
 0x115   :  { %v95_v48 = vmul.f32 %v1108_v36, %v86_v41  ;;  %v96_v50 = vmul.f32 %v1115_v38, %v85_v40 }
 0x117   :  { %v132_v42 = vpop.permute.xlu0 %131  ;;  %v100_v43 = vpop.permute.xlu1 %99 }
 0x118   :  { %v102_v44 = vsel %vm101_vm1, %v98_v27, %v100_v43  ;;  %v103_v45 = vsel %vm101_vm1, %v100_v43, %v98_v27 }
 0x119   :  { %v112_v49 = vmul.f32 %v1112_v37, %v103_v45  ;;  %v113_v51 = vmul.f32 %v1118_v39, %v102_v44  ;;  %v1208_v45 = vld [vmem:[%s1484_s3 + $0x18] ss:$0 sm:$0xff] }
 0x11b   :  { %v149_v52 = vpop.permute.xlu0 %148  ;;  %v117_v53 = vpop.permute.xlu1 %116  ;;  %v779_v54 = vpack.c.bf16 %v113_v51, %v96_v50  ;;  %v781_v55 = vpack.c.bf16 %v112_v49, %v95_v48  ;;  %v1215_v51 = vld [vmem:[%s1484_s3 + $0x10] ss:$0 sm:$0xff] }
 0x11c   :  { %v119_v61 = vsel %vm118_vm2, %v115_v34, %v117_v53  ;;  %v120_v62 = vsel %vm118_vm2, %v117_v53, %v115_v34  ;;  %v1190_v34 = vrot.slane %v1104_v33, %v191_v23 }
 0x11d   :  { %780 = vmatprep.subr.bf16.mxu0 %v779_v54  ;;  %v129_v5 = vmul.f32 %v1136_v56, %v120_v62  ;;  %v130_v6 = vmul.f32 %v1140_v58, %v119_v61  ;;  %v1224_v61 = vld [vmem:[%s1487_s6] sm:$0xff] }
 0x11e   :  { %782 = vmatpush1.bf16.msra.mxu0 %v781_v55 }
 0x11f   :  { %v166_v63 = vpop.permute.xlu0 %165  ;;  %v134_v0 = vpop.permute.xlu1 %133 }
 0x120   :  { %v136_v1 = vsel %vm135_vm3, %v132_v42, %v134_v0  ;;  %v137_v2 = vsel %vm135_vm3, %v134_v0, %v132_v42 }
 0x121   :  { %v146_v7 = vmul.f32 %v1144_v59, %v137_v2  ;;  %v147_v8 = vmul.f32 %v1147_v60, %v136_v1 }
 0x123   :  { %v183_v9 = vpop.permute.xlu0 %182  ;;  %v151_v10 = vpop.permute.xlu1 %150  ;;  %v783_v13 = vpack.c.bf16 %v147_v8, %v130_v6  ;;  %v785_v14 = vpack.c.bf16 %v146_v7, %v129_v5 }
 0x124   :  { %v153_v15 = vsel %vm152_vm4, %v149_v52, %v151_v10  ;;  %v154_v16 = vsel %vm152_vm4, %v151_v10, %v149_v52 }
 0x125   :  { %v163_v20 = vmul.f32 %v1159_v3, %v153_v15  ;;  %v164_v22 = vmul.f32 %v1162_v4, %v154_v16  ;;  %784 = vmatprep.subr.bf16.mxu0 %v783_v13 }
 0x126   :  { %786 = vmatpush1.bf16.msra.mxu0 %v785_v14 }
 0x127   :  { %v200_v24 = vpop.permute.xlu0 %199  ;;  %v168_v25 = vpop.permute.xlu1 %167  ;;  %v787_v27 = vpack.c.bf16 %v164_v22, %v1007_v12  ;;  %v789_v28 = vpack.c.bf16 %v163_v20, %v1001_v11 }
 0x128   :  { %v170_v12 = vsel %vm169_vm5, %v166_v63, %v168_v25  ;;  %v171_v11 = vsel %vm169_vm5, %v168_v25, %v166_v63 }
 0x129   :  { %788 = vmatprep.subr.bf16.mxu0 %v787_v27  ;;  %v180_v31 = vmul.f32 %v1180_v30, %v170_v12  ;;  %v181_v33 = vmul.f32 %v1183_v32, %v171_v11 }
 0x12a   :  { %790 = vmatpush1.bf16.msra.mxu0 %v789_v28 }
 0x12b   :  { %v185_v35 = vpop.permute.xlu1 %184  ;;  %v465_v40 = vpop.permute.xlu0 %464 }
 0x12c   :  { %v187_v41 = vsel %vm186_vm6, %v183_v9, %v185_v35  ;;  %v188_v42 = vsel %vm186_vm6, %v185_v35, %v183_v9 }
 0x12d   :  { %v197_v43 = vmul.f32 %v1187_v26, %v187_v41  ;;  %v198_v44 = vmul.f32 %v1190_v34, %v188_v42 }
 0x12f   :  { %v202_v46 = vpop.permute.xlu1 %201  ;;  %v473_v47 = vpop.permute.xlu0 %472  ;;  %v791_v48 = vpack.c.bf16 %v198_v44, %v181_v33  ;;  %v793_v49 = vpack.c.bf16 %v197_v43, %v180_v31 }
 0x130   :  { %v205_v50 = vsel %vm203_vm7, %v202_v46, %v200_v24  ;;  %v204_v52 = vsel %vm203_vm7, %v200_v24, %v202_v46 }
 0x131   :  { %v215_v53 = vmul.f32 %v1208_v45, %v205_v50  ;;  %792 = vmatprep.subr.bf16.mxu0 %v791_v48  ;;  %v214_v57 = vmul.f32 %v1215_v51, %v204_v52 }
 0x132   :  { %794 = vmatpush1.bf16.msra.mxu0 %v793_v49 }
 0x133   :  { %v467_v54 = vpop.permute.xlu1 %466  ;;  %v481_v55 = vpop.permute.xlu0 %480  ;;  %245 = vmatprep.subr.mxu0 %v215_v53 }
 0x134   :  { %v468_v62 = vsel %vm84_vm0, %v465_v40, %v467_v54  ;;  %v469_v63 = vsel %vm84_vm0, %v467_v54, %v465_v40 }
 0x135   :  { %v470_v6 = vmul.f32 %v469_v63, %v1108_v36  ;;  %v471_v7 = vmul.f32 %v468_v62, %v1115_v38 }
 0x136   :  { %246 = vmatpush1.msra.mxu0 %v214_v57 }
 0x137   :  { %v475_v0 = vpop.permute.xlu1 %474  ;;  %v489_v1 = vpop.permute.xlu0 %488  ;;  %772 = vmatmul.mubr.msk.f32.vlgmr.msra.gmra.mrb[0].mxu0 %vm225_vm8, %v1224_v61 }
 0x138   :  { %v476_v2 = vsel %vm101_vm1, %v473_v47, %v475_v0  ;;  %v477_v5 = vsel %vm101_vm1, %v475_v0, %v473_v47  ;;  %597 = vmatprep.mubr.f32.mxu0 %v917_v17 }
 0x139   :  { %v478_v8 = vmul.f32 %v477_v5, %v1112_v37  ;;  %v479_v9 = vmul.f32 %v476_v2, %v1118_v39 }
 0x13b   :  { %v813_v10 = vpack.c.bf16 %v478_v8, %v470_v6  ;;  %v483_v13 = vpop.permute.xlu1 %482  ;;  %v811_v14 = vpack.c.bf16 %v479_v9, %v471_v7  ;;  %v497_v15 = vpop.permute.xlu0 %496  ;;  %v216_v8 = vld [vmem:[#allocation2] sm:$0xff]  ;;  %v217_v9 = vld [vmem:[#allocation2 + $0x8] sm:$0xff] }
 0x13c   :  { %v484_v16 = vsel %vm118_vm2, %v481_v55, %v483_v13  ;;  %v485_v19 = vsel %vm118_vm2, %v483_v13, %v481_v55 }
 0x13d   :  { %812 = vmatprep.subr.bf16.mxu0 %v811_v14  ;;  %v486_v24 = vmul.f32 %v485_v19, %v1136_v56  ;;  %v487_v25 = vmul.f32 %v484_v16, %v1140_v58 }
 0x13e   :  { %814 = vmatpush1.bf16.msra.mxu0 %v813_v10 }
 0x13f   :  { %v491_v20 = vpop.permute.xlu1 %490  ;;  %v505_v11 = vpop.permute.xlu0 %504 }
 0x140   :  { %v492_v22 = vsel %vm135_vm3, %v489_v1, %v491_v20  ;;  %v493_v23 = vsel %vm135_vm3, %v491_v20, %v489_v1 }
 0x141   :  { %v494_v27 = vmul.f32 %v493_v23, %v1144_v59  ;;  %v495_v28 = vmul.f32 %v492_v22, %v1147_v60 }
 0x143   :  { %v817_v12 = vpack.c.bf16 %v494_v27, %v486_v24  ;;  %v499_v35 = vpop.permute.xlu1 %498  ;;  %v815_v40 = vpack.c.bf16 %v495_v28, %v487_v25  ;;  %v513_v47 = vpop.permute.xlu0 %512  ;;  %v530_v27 = vld [vmem:[#allocation2 + $0x18] sm:$0xff] }
 0x144   :  { %v500_v41 = vsel %vm152_vm4, %v497_v15, %v499_v35  ;;  %v501_v42 = vsel %vm152_vm4, %v499_v35, %v497_v15 }
 0x145   :  { %v502_v31 = vmul.f32 %v500_v41, %v1159_v3  ;;  %v503_v33 = vmul.f32 %v501_v42, %v1162_v4  ;;  %816 = vmatprep.subr.bf16.mxu0 %v815_v40 }
 0x146   :  { %818 = vmatpush1.bf16.msra.mxu0 %v817_v12 }
 0x147   :  { %v821_v43 = vpack.c.bf16 %v502_v31, %v1041_v18  ;;  %v507_v44 = vpop.permute.xlu1 %506  ;;  %v819_v46 = vpack.c.bf16 %v503_v33, %v1051_v21  ;;  %v521_v57 = vpop.permute.xlu0 %520 }
 0x148   :  { %v508_v48 = vsel %vm169_vm5, %v505_v11, %v507_v44  ;;  %v509_v49 = vsel %vm169_vm5, %v507_v44, %v505_v11 }
 0x149   :  { %820 = vmatprep.subr.bf16.mxu0 %v819_v46  ;;  %v510_v18 = vmul.f32 %v508_v48, %v1180_v30  ;;  %v511_v21 = vmul.f32 %v509_v49, %v1183_v32  ;;  %v57_v46 = vld [vmem:[%s1490_s9] sm:$0xff] }
 0x14a   :  { %822 = vmatpush1.bf16.msra.mxu0 %v821_v43 }
 0x14b   :  { %v515_v50 = vpop.permute.xlu1 %514 }
 0x14c   :  { %v516_v52 = vsel %vm186_vm6, %v513_v47, %v515_v50  ;;  %v517_v53 = vsel %vm186_vm6, %v515_v50, %v513_v47 }
 0x14d   :  { %v518_v54 = vmul.f32 %v516_v52, %v1187_v26  ;;  %v519_v55 = vmul.f32 %v517_v53, %v1190_v34 }
 0x14f   :  { %v825_v62 = vpack.c.bf16 %v518_v54, %v510_v18  ;;  %v523_v63 = vpop.permute.xlu1 %522  ;;  %v823_v0 = vpack.c.bf16 %v519_v55, %v511_v21 }
 0x150   :  { %v525_v1 = vsel %vm203_vm7, %v523_v63, %v521_v57  ;;  %v524_v2 = vsel %vm203_vm7, %v521_v57, %v523_v63 }
 0x151   :  { %v527_v5 = vmul.f32 %v1208_v45, %v525_v1  ;;  %824 = vmatprep.subr.bf16.mxu0 %v823_v0  ;;  %v526_v6 = vmul.f32 %v1215_v51, %v524_v2 }
 0x152   :  { %826 = vmatpush1.bf16.msra.mxu0 %v825_v62 }
 0x153   :  { %549 = vmatprep.subr.mxu0 %v527_v5 }
 0x156   :  { %550 = vmatpush1.msra.mxu0 %v526_v6 }
 0x157   :  { %776 = vmatmul.mubr.msk.f32.vlgmr.msra.gmra.mrb[2].mxu0 %vm225_vm8, %v1224_v61  ;;  %v529_v61 = vld [vmem:[#allocation2 + $0x10] sm:$0xff] }
 0x158   :  { %v221_v7 = vpop.permute.xlu0 %220 }
 0x159   :  { %v223_v10 = vmul.f32 %v221_v7, %v216_v8  ;;  %v224_v14 = vmul.f32 %v221_v7, %v217_v9  ;;  %v531_v28 = vmul.f32 %v529_v61, %v221_v7  ;;  %v532_v11 = vmul.f32 %v530_v27, %v221_v7 }
 0x15c   :  { %v609_v41 = vpop.permute.xlu0 %608 }
 0x160   :  { %v304_v15 = vpop.permute.xlu1 %303 }
 0x20a   :  { %v295_v13 = vpop.f32.mrb[0].mxu0 }
 0x20b   :  { %v296_v16 = vadd.f32 %v295_v13, %v223_v10  ;;  %v297_v19 = vpop.f32.mrb[1].mxu0 }
 0x20c   :  { %v298_v20 = vadd.f32 %v297_v19, %v224_v14 }
 0x20d   :  { %v306_v22 = vadd.f32 %v304_v15, %v296_v16 }
 0x20e   :  { %v307_v23 = vadd.f32 %v304_v15, %v298_v20 }
 0x20f   :  { %v1281_v24 = vmax.f32 %v306_v22, 0.0 }
 0x210   :  { %v1283_v25 = vmax.f32 %v307_v23, 0.0 }
 0x211   :  { %310 = vrot.lane.b32.xlu1 %v1281_v24, %s910_s4 }
 0x212   :  { %312 = vrot.lane.b32.xlu0 %v1283_v25, %s910_s4 }
 0x215   :  { %318 = vrot.lane.b32.xlu1 %v1281_v24, %s908_s24 }
 0x216   :  { %320 = vrot.lane.b32.xlu0 %v1283_v25, %s908_s24 }
 0x219   :  { %326 = vrot.lane.b32.xlu1 %v1281_v24, %s911_s5 }
 0x21a   :  { %328 = vrot.lane.b32.xlu0 %v1283_v25, %s911_s5 }
 0x21d   :  { %334 = vrot.lane.b32.xlu1 %v1281_v24, %s912_s14 }
 0x21e   :  { %336 = vrot.lane.b32.xlu0 %v1283_v25, %s912_s14 }
 0x221   :  { %342 = vrot.lane.b32.xlu1 %v1281_v24, %s913_s15 }
 0x222   :  { %344 = vrot.lane.b32.xlu0 %v1283_v25, %s913_s15 }
 0x225   :  { %350 = vrot.lane.b32.xlu1 %v1281_v24, %s914_s16 }
 0x226   :  { %352 = vrot.lane.b32.xlu0 %v1283_v25, %s914_s16 }
 0x229   :  { %358 = vrot.lane.b32.xlu1 %v1281_v24, %s915_s19 }
 0x22a   :  { %v599_v12 = vpop.f32.mrb[2].mxu0  ;;  %360 = vrot.lane.b32.xlu0 %v1283_v25, %s915_s19 }
 0x22b   :  { %v600_v35 = vadd.f32 %v599_v12, %v531_v28  ;;  %v601_v40 = vpop.f32.mrb[3].mxu0 }
 0x22c   :  { %v602_v42 = vadd.f32 %v601_v40, %v532_v11 }
 0x22d   :  { %v611_v31 = vadd.f32 %v609_v41, %v600_v35  ;;  %366 = vrot.lane.b32.xlu1 %v1281_v24, %s916_s20 }
 0x22e   :  { %v612_v33 = vadd.f32 %v609_v41, %v602_v42  ;;  %368 = vrot.lane.b32.xlu0 %v1283_v25, %s916_s20 }
 0x22f   :  { %v1317_v43 = vmax.f32 %v611_v31, 0.0 }
 0x230   :  { %v1319_v44 = vmax.f32 %v612_v33, 0.0 }
 0x231   :  { %615 = vrot.lane.b32.xlu1 %v1317_v43, %s910_s4 }
 0x232   :  { %617 = vrot.lane.b32.xlu0 %v1319_v44, %s910_s4 }
 0x235   :  { %623 = vrot.lane.b32.xlu1 %v1317_v43, %s908_s24 }
 0x236   :  { %625 = vrot.lane.b32.xlu0 %v1319_v44, %s908_s24 }
 0x239   :  { %631 = vrot.lane.b32.xlu1 %v1317_v43, %s911_s5 }
 0x23a   :  { %633 = vrot.lane.b32.xlu0 %v1319_v44, %s911_s5 }
 0x23d   :  { %639 = vrot.lane.b32.xlu1 %v1317_v43, %s912_s14 }
 0x23e   :  { %641 = vrot.lane.b32.xlu0 %v1319_v44, %s912_s14 }
 0x241   :  { %647 = vrot.lane.b32.xlu1 %v1317_v43, %s913_s15 }
 0x242   :  { %649 = vrot.lane.b32.xlu0 %v1319_v44, %s913_s15 }
 0x245   :  { %655 = vrot.lane.b32.xlu1 %v1317_v43, %s914_s16 }
 0x246   :  { %657 = vrot.lane.b32.xlu0 %v1319_v44, %s914_s16 }
 0x249   :  { %663 = vrot.lane.b32.xlu1 %v1317_v43, %s915_s19 }
 0x24a   :  { %665 = vrot.lane.b32.xlu0 %v1319_v44, %s915_s19 }
 0x24d   :  { %671 = vrot.lane.b32.xlu1 %v1317_v43, %s916_s20 }
 0x24e   :  { %673 = vrot.lane.b32.xlu0 %v1319_v44, %s916_s20 }
 0x251   :  { %376 = vperm.xlu1 %857, %v57_v46  }
 0x283   :  { %v311_v47 = vpop.permute.xlu1 %310 }
 0x284   :  { %v313_v48 = vpop.permute.xlu0 %312 }
 0x285   :  { %v314_v49 = vsel %vm84_vm0, %v311_v47, %v313_v48  ;;  %v315_v50 = vsel %vm84_vm0, %v313_v48, %v311_v47 }
 0x286   :  { %v316_v54 = vmul.f32 %v315_v50, %v1108_v36  ;;  %v317_v57 = vmul.f32 %v314_v49, %v1115_v38 }
 0x287   :  { %v319_v52 = vpop.permute.xlu1 %318 }
 0x288   :  { %v321_v53 = vpop.permute.xlu0 %320 }
 0x289   :  { %v322_v18 = vsel %vm101_vm1, %v319_v52, %v321_v53  ;;  %v323_v21 = vsel %vm101_vm1, %v321_v53, %v319_v52 }
 0x28a   :  { %v324_v55 = vmul.f32 %v323_v21, %v1112_v37  ;;  %v325_v62 = vmul.f32 %v322_v18, %v1118_v39 }
 0x28b   :  { %v327_v63 = vpop.permute.xlu1 %326 }
 0x28c   :  { %v329_v0 = vpop.permute.xlu0 %328  ;;  %v795_v1 = vpack.c.bf16 %v325_v62, %v317_v57  ;;  %v797_v2 = vpack.c.bf16 %v324_v55, %v316_v54 }
 0x28d   :  { %v330_v5 = vsel %vm118_vm2, %v327_v63, %v329_v0  ;;  %v331_v6 = vsel %vm118_vm2, %v329_v0, %v327_v63 }
 0x28e   :  { %796 = vmatprep.subr.bf16.mxu1 %v795_v1  ;;  %v332_v13 = vmul.f32 %v331_v6, %v1136_v56  ;;  %v333_v14 = vmul.f32 %v330_v5, %v1140_v58  ;;  %v1409_v1 = vld [vmem:[%s1489_s8] sm:$0xff]  ;;  %s918_s8 = smov [#allocation5]  }
 0x28f   :  { %798 = vmatpush1.bf16.msra.mxu1 %v797_v2  ;;  %v335_v7 = vpop.permute.xlu1 %334  ;;  %s758_s5 = sshll.u32 %s918_s8, 4  ;;  %s759_s5 = int_to_ptr.vmem [resolvable:$true] %s758_s5 }
 0x290   :  { %v337_v8 = vpop.permute.xlu0 %336  ;;  %s880_s14 = scalar_lea.vmem %s759_s5, 512  ;;  %p885_p9 = scmp.lt.s32.totalorder %s759_s5, %s759_s5 }
 0x291   :  { %v338_v9 = vsel %vm135_vm3, %v335_v7, %v337_v8  ;;  %v339_v10 = vsel %vm135_vm3, %v337_v8, %v335_v7  ;;  %p881_p8 = scmp.ne.s32.totalorder %s759_s5, %s880_s14  ;;  %p886_p10 = scmp.lt.s32.totalorder %s880_s14, %s880_s14 }
 0x292   :  { %v340_v15 = vmul.f32 %v339_v10, %v1144_v59  ;;  %v341_v16 = vmul.f32 %v338_v9, %v1147_v60 }
 0x293   :  { %v343_v19 = vpop.permute.xlu1 %342  ;;  %p887_p11 = por %p886_p10, %p885_p9 }
 0x294   :  { %v345_v20 = vpop.permute.xlu0 %344  ;;  %v799_v22 = vpack.c.bf16 %v341_v16, %v333_v14  ;;  %v801_v23 = vpack.c.bf16 %v340_v15, %v332_v13 }
 0x295   :  { %v346_v61 = vsel %vm152_vm4, %v343_v19, %v345_v20  ;;  %v347_v27 = vsel %vm152_vm4, %v345_v20, %v343_v19  ;;  %p888_p12 = pnand %p887_p11, %p881_p8 }
 0x296   :  { %v348_v28 = vmul.f32 %v346_v61, %v1159_v3  ;;  %v349_v12 = vmul.f32 %v347_v27, %v1162_v4  ;;  %800 = vmatprep.subr.bf16.mxu1 %v799_v22 }
 0x297   :  { %802 = vmatpush1.bf16.msra.mxu1 %v801_v23  ;;  %v351_v11 = vpop.permute.xlu1 %350 }
 0x298   :  { %v353_v35 = vpop.permute.xlu0 %352  ;;  %v803_v40 = vpack.c.bf16 %v349_v12, %v1283_v25  ;;  %v805_v41 = vpack.c.bf16 %v348_v28, %v1281_v24 }
 0x299   :  { %v354_v42 = vsel %vm169_vm5, %v351_v11, %v353_v35  ;;  %v355_v31 = vsel %vm169_vm5, %v353_v35, %v351_v11 }
 0x29a   :  { %804 = vmatprep.subr.bf16.mxu1 %v803_v40  ;;  %v356_v25 = vmul.f32 %v354_v42, %v1180_v30  ;;  %v357_v24 = vmul.f32 %v355_v31, %v1183_v32 }
 0x29b   :  { %806 = vmatpush1.bf16.msra.mxu1 %v805_v41  ;;  %v359_v33 = vpop.permute.xlu1 %358 }
 0x29c   :  { %v361_v46 = vpop.permute.xlu0 %360 }
 0x29d   :  { %v362_v47 = vsel %vm186_vm6, %v359_v33, %v361_v46  ;;  %v363_v48 = vsel %vm186_vm6, %v361_v46, %v359_v33 }
 0x29e   :  { %v364_v49 = vmul.f32 %v362_v47, %v1187_v26  ;;  %v365_v50 = vmul.f32 %v363_v48, %v1190_v34 }
 0x29f   :  { %v367_v52 = vpop.permute.xlu1 %366 }
 0x2a0   :  { %v369_v53 = vpop.permute.xlu0 %368  ;;  %v807_v18 = vpack.c.bf16 %v365_v50, %v357_v24  ;;  %v809_v21 = vpack.c.bf16 %v364_v49, %v356_v25 }
 0x2a1   :  { %v371_v54 = vsel %vm203_vm7, %v369_v53, %v367_v52  ;;  %v370_v55 = vsel %vm203_vm7, %v367_v52, %v369_v53 }
 0x2a2   :  { %v373_v57 = vmul.f32 %v1208_v45, %v371_v54  ;;  %808 = vmatprep.subr.bf16.mxu1 %v807_v18  ;;  %v372_v0 = vmul.f32 %v1215_v51, %v370_v55 }
 0x2a3   :  { %810 = vmatpush1.bf16.msra.mxu1 %v809_v21  ;;  %v616_v62 = vpop.permute.xlu1 %615 }
 0x2a4   :  { %v618_v63 = vpop.permute.xlu0 %617  ;;  %398 = vmatprep.subr.mxu1 %v373_v57 }
 0x2a5   :  { %v619_v2 = vsel %vm84_vm0, %v616_v62, %v618_v63  ;;  %v620_v5 = vsel %vm84_vm0, %v618_v63, %v616_v62 }
 0x2a6   :  { %v621_v10 = vmul.f32 %v620_v5, %v1108_v36  ;;  %v622_v13 = vmul.f32 %v619_v2, %v1115_v38 }
 0x2a7   :  { %399 = vmatpush1.msra.mxu1 %v372_v0  ;;  %v624_v6 = vpop.permute.xlu1 %623 }
 0x2a8   :  { %v626_v7 = vpop.permute.xlu0 %625  ;;  %773 = vmatmul.mubr.msk.f32.vlgmr.msra.gmra.mrb[0].mxu1 %vm225_vm8, %v1409_v1 }
 0x2a9   :  { %v627_v8 = vsel %vm101_vm1, %v624_v6, %v626_v7  ;;  %v628_v9 = vsel %vm101_vm1, %v626_v7, %v624_v6  ;;  %743 = vmatprep.mubr.f32.mxu1 %v917_v17 }
 0x2aa   :  { %v629_v14 = vmul.f32 %v628_v9, %v1112_v37  ;;  %v630_v15 = vmul.f32 %v627_v8, %v1118_v39 }
 0x2ab   :  { %v632_v16 = vpop.permute.xlu1 %631 }
 0x2ac   :  { %v829_v19 = vpack.c.bf16 %v629_v14, %v621_v10  ;;  %v634_v20 = vpop.permute.xlu0 %633  ;;  %v827_v22 = vpack.c.bf16 %v630_v15, %v622_v13 }
 0x2ad   :  { %v635_v23 = vsel %vm118_vm2, %v632_v16, %v634_v20  ;;  %v636_v61 = vsel %vm118_vm2, %v634_v20, %v632_v16 }
 0x2ae   :  { %828 = vmatprep.subr.bf16.mxu1 %v827_v22  ;;  %v637_v39 = vmul.f32 %v636_v61, %v1136_v56  ;;  %v638_v27 = vmul.f32 %v635_v23, %v1140_v58 }
 0x2af   :  { %830 = vmatpush1.bf16.msra.mxu1 %v829_v19  ;;  %v640_v17 = vpop.permute.xlu1 %639 }
 0x2b0   :  { %v642_v36 = vpop.permute.xlu0 %641 }
 0x2b1   :  { %v643_v38 = vsel %vm135_vm3, %v640_v17, %v642_v36  ;;  %v644_v37 = vsel %vm135_vm3, %v642_v36, %v640_v17 }
 0x2b2   :  { %v645_v28 = vmul.f32 %v644_v37, %v1144_v59  ;;  %v646_v12 = vmul.f32 %v643_v38, %v1147_v60 }
 0x2b3   :  { %v648_v11 = vpop.permute.xlu1 %647 }
 0x2b4   :  { %v833_v35 = vpack.c.bf16 %v645_v28, %v637_v39  ;;  %v650_v40 = vpop.permute.xlu0 %649  ;;  %v831_v41 = vpack.c.bf16 %v646_v12, %v638_v27 }
 0x2b5   :  { %v651_v42 = vsel %vm152_vm4, %v648_v11, %v650_v40  ;;  %v652_v31 = vsel %vm152_vm4, %v650_v40, %v648_v11 }
 0x2b6   :  { %v653_v33 = vmul.f32 %v651_v42, %v1159_v3  ;;  %v654_v56 = vmul.f32 %v652_v31, %v1162_v4  ;;  %832 = vmatprep.subr.bf16.mxu1 %v831_v41 }
 0x2b7   :  { %834 = vmatpush1.bf16.msra.mxu1 %v833_v35  ;;  %v656_v58 = vpop.permute.xlu1 %655 }
 0x2b8   :  { %v837_v59 = vpack.c.bf16 %v653_v33, %v1317_v43  ;;  %v658_v60 = vpop.permute.xlu0 %657  ;;  %v835_v46 = vpack.c.bf16 %v654_v56, %v1319_v44 }
 0x2b9   :  { %v659_v47 = vsel %vm169_vm5, %v656_v58, %v658_v60  ;;  %v660_v48 = vsel %vm169_vm5, %v658_v60, %v656_v58 }
 0x2ba   :  { %836 = vmatprep.subr.bf16.mxu1 %v835_v46  ;;  %v661_v43 = vmul.f32 %v659_v47, %v1180_v30  ;;  %v662_v44 = vmul.f32 %v660_v48, %v1183_v32 }
 0x2bb   :  { %838 = vmatpush1.bf16.msra.mxu1 %v837_v59  ;;  %v664_v25 = vpop.permute.xlu1 %663 }
 0x2bc   :  { %v666_v3 = vpop.permute.xlu0 %665 }
 0x2bd   :  { %v667_v4 = vsel %vm186_vm6, %v664_v25, %v666_v3  ;;  %v668_v24 = vsel %vm186_vm6, %v666_v3, %v664_v25 }
 0x2be   :  { %v669_v49 = vmul.f32 %v667_v4, %v1187_v26  ;;  %v670_v50 = vmul.f32 %v668_v24, %v1190_v34 }
 0x2bf   :  { %v672_v52 = vpop.permute.xlu1 %671 }
 0x2c0   :  { %v841_v53 = vpack.c.bf16 %v669_v49, %v661_v43  ;;  %v674_v18 = vpop.permute.xlu0 %673  ;;  %v839_v21 = vpack.c.bf16 %v670_v50, %v662_v44 }
 0x2c1   :  { %v676_v54 = vsel %vm203_vm7, %v674_v18, %v672_v52  ;;  %v675_v55 = vsel %vm203_vm7, %v672_v52, %v674_v18 }
 0x2c2   :  { %v678_v57 = vmul.f32 %v1208_v45, %v676_v54  ;;  %840 = vmatprep.subr.bf16.mxu1 %v839_v21  ;;  %v677_v30 = vmul.f32 %v1215_v51, %v675_v55 }
 0x2c3   :  { %842 = vmatpush1.bf16.msra.mxu1 %v841_v53 }
 0x2c4   :  { %695 = vmatprep.subr.mxu1 %v678_v57 }
 0x2c7   :  { %696 = vmatpush1.msra.mxu1 %v677_v30 }
 0x2c8   :  { %778 = vmatmul.mubr.msk.f32.vlgmr.msra.gmra.mrb[2].mxu1 %vm225_vm8, %v1409_v1 }
 0x2d0   :  { %v377_v32 = vpop.permute.xlu1 %376 }
 0x37b   :  { %v448_v26 = vpop.f32.mrb[0].mxu1 }
 0x37c   :  { %v449_v34 = vadd.f32 %v448_v26, %v377_v32  ;;  %v450_v62 = vpop.f32.mrb[1].mxu1 }
 0x37d   :  { %v451_v63 = vadd.f32 %v450_v62, %v377_v32 }
 0x37e   :  { %453 = vst [vmem:[#allocation5] sm:$0xff] %v449_v34 }
 0x37f   :  { %454 = vst [vmem:[#allocation5 + $0x8] sm:$0xff] %v451_v63 }
 0x39b   :  { %v745_v29 = vpop.f32.mrb[2].mxu1 }
 0x39c   :  { %v746_v45 = vadd.f32 %v745_v29, %v377_v32  ;;  %v747_v0 = vpop.f32.mrb[3].mxu1 }
 0x39d   :  { %v748_v2 = vadd.f32 %v747_v0, %v377_v32 }
 0x39e   :  { %751 = vst [vmem:[#allocation5 + $0x10] sm:$0xff] %v746_v45 }
 0x39f   :  { %752 = vst [vmem:[#allocation5 + $0x18] sm:$0xff] %v748_v2 }
 0x3a0   :  { %891 = shalt.err (!%p888_p12)
}
 0x3a1   :  { %s892_s19 = scalar_lea.hbm %s1491_s10, 512 }
 0x3a2   :  { %p893_p13 = scmp.ne.s32.totalorder %s1491_s10, %s892_s19  ;;  %p896_p0 = scmp.lt.u32.totalorder %s892_s19, %s1491_s10 }
 0x3a4   :  { %p898_p1 = pnand %p896_p0, %p893_p13 }
 0x3a6   :  { %901 = shalt.err (!%p898_p1)
}
 0x3a7   :  { %764 = dma.vmem_to_hbm [thread:$0]  %s759_s5, 512, %s1491_s10, [#allocation4], %s907_s23, %s907_s23, %s908_s24  }
 0x3a8   :  { %904 = dma.done.wait [#allocation4], 512  }
 0x3a9   :  { %905 = vsyncadd [#allocation4], 4294966784 }
 0x3aa   :  { %768 = vsyncpa [#allocation3], 1 }
 0x3ab   :  { %769 = vsyncpa [#allocation4], 1 }

</bundles_post_ra>
